<compile_context>
chip_gen: v7x
topology: tpu7x:2x2x1
jax: 0.10.0
libtpu: 0.0.40
codegen_flags: <defaults>
</compile_context>

<pallas_src>
import jax
import jax.numpy as jnp
from jax.experimental import pallas as pl
from jax.experimental.pallas import tpu as pltpu


# ------------------------------- helpers ------------------------------------

def _round_up(x, m):
    return ((x + m - 1) // m) * m


_VMEM_TILE_BUDGET = 8 << 20     # bytes reserved for per-row (batch-tile) slabs
_TM_CAP = 1024                  # absolute batch-tile cap


# ----------------------------- Pallas kernel --------------------------------

def _make_fused_mlp_kernel(num_layers):
    """Fused MLP: y = relu(x @ W_i + b_i) for i < last, y = x @ W_last + b_last.

    Ref layout: (x_ref, w0_ref, b0_ref, w1_ref, b1_ref, ..., o_ref).
    x/W refs are bf16 (native MXU path), biases are f32; accumulation,
    bias-add and ReLU are f32; the intermediate activation lives entirely in
    vregs/VMEM and is re-cast to bf16 only as the next matmul operand.
    """
    def kernel(*refs):
        x_ref = refs[0]
        o_ref = refs[-1]
        x = x_ref[...]                                   # bf16 (tm, k)
        for i in range(num_layers):
            w = refs[1 + 2 * i][...]                     # bf16 (k, n)
            b = refs[2 + 2 * i][...]                     # f32  (1, n)
            y = jnp.dot(x, w, preferred_element_type=jnp.float32) + b
            if i != num_layers - 1:
                y = jnp.maximum(y, 0.0)                  # ReLU in f32
                x = y.astype(jnp.bfloat16)               # bf16 for next MXU pass
            else:
                x = y
        o_ref[...] = x.astype(o_ref.dtype)

    return kernel


# --------------------------- Model construction -----------------------------

def init_embedding_model(key, input_size, emb_size=(64,), bn_eps=1e-5):
    """Deterministically initialise parameters matching Embedding_Model.

    Weights are stored transposed (in, out) so the kernel computes x @ W + b,
    eval-mode BN is folded into the weights, hidden dims are padded to 128
    (lane-dense intermediates); the input K dim and the final output dim are
    left unpadded.  Kernel weights are kept in bf16, biases in f32.
    """
    weights_pad, biases_pad = [], []
    weights_ref, biases_ref = [], []          # unpadded f32, for the reference
    relu_flags = []
    in_dim = input_size
    for idx, size in enumerate(emb_size):
        is_last = idx == len(emb_size) - 1
        key, kw, kb = jax.random.split(key, 3)
        bound = 1.0 / (in_dim ** 0.5)
        # PyTorch stores weight as (out, in); we keep the transposed (in, out).
        w = jax.random.uniform(kw, (in_dim, size), jnp.float32, -bound, bound)
        b = jax.random.uniform(kb, (size,), jnp.float32, -bound, bound)

        if not is_last:
            # BatchNorm1d init: gamma=1, beta=0, running_mean=0, running_var=1.
            gamma = jnp.ones((size,), jnp.float32)
            beta = jnp.zeros((size,), jnp.float32)
            running_mean = jnp.zeros((size,), jnp.float32)
            running_var = jnp.ones((size,), jnp.float32)
            scale = gamma / jnp.sqrt(running_var + bn_eps)
            shift = beta - running_mean * scale
            # Fold eval-mode BN:  (xW + b)*s + t = x(W*s) + (b*s + t)
            w = w * scale[None, :]
            b = b * scale + shift

        weights_ref.append(w)
        biases_ref.append(b[None, :])
        relu_flags.append(not is_last)

        # Hidden output dims padded to 128 (lane-dense intermediates); the
        # final output dim is NOT padded, so the output block is a full-dim
        # block and no post-kernel column slice is needed.
        out_cols = size if is_last else _round_up(size, 128)
        in_rows = in_dim if idx == 0 else weights_pad[-1].shape[1]
        w_pad = jnp.zeros((in_rows, out_cols), jnp.float32).at[:in_dim, :size].set(w)
        b_pad = jnp.zeros((1, out_cols), jnp.float32).at[0, :size].set(b)
        weights_pad.append(w_pad.astype(jnp.bfloat16))
        biases_pad.append(b_pad)

        in_dim = size

    return {
        "weights": weights_pad,        # bf16, padded hidden dims
        "biases": biases_pad,          # f32
        "ref_weights": weights_ref,    # f32, unpadded
        "ref_biases": biases_ref,
        "relu": relu_flags,
        "in_dim": input_size,
        "out_dim": emb_size[-1],
    }


# ------------------------------ Forward pass ---------------------------------

def embedding_model_forward(params, feat):
    """Eval-mode forward pass of Embedding_Model as ONE fused Pallas kernel."""
    weights, biases = params["weights"], params["biases"]
    num_layers = len(weights)
    batch, in_dim = feat.shape
    out_dim = params["out_dim"]

    # ---- batch tile derived from a VMEM budget (not a hard-coded 256) ------
    # Per-row bytes: double-buffered bf16 x block + double-buffered f32 output
    # block + per-hidden-layer f32 activation and its bf16 copy (vregs/VMEM).
    per_row = 2 * 2 * in_dim + 2 * 4 * out_dim
    per_row += sum(6 * w.shape[1] for w in weights[:-1])
    cap = max(8, min(_TM_CAP, (_VMEM_TILE_BUDGET // per_row) // 8 * 8))

    if batch <= cap:
        tm, batch_pad = batch, batch          # one full-dim tile, zero padding
    else:
        tm = cap
        batch_pad = _round_up(batch, tm)      # ragged tail only

    # bf16 matmul operands (in a real pipeline the upstream producer emits
    # bf16 directly; this cast sits at the model boundary).
    x = feat.astype(jnp.bfloat16)
    if batch_pad != batch:
        x = jnp.pad(x, ((0, batch_pad - batch), (0, 0)))

    in_specs = [pl.BlockSpec((tm, in_dim), lambda i: (i, 0))]
    args = [x]
    for w, b in zip(weights, biases):
        # Weights/biases: full arrays, constant index_map -> resident across
        # the batch grid (fetched once).
        in_specs.append(pl.BlockSpec(w.shape, lambda i: (0, 0)))
        in_specs.append(pl.BlockSpec(b.shape, lambda i: (0, 0)))
        args.append(w)
        args.append(b)

    # Raise the scoped-VMEM limit only if a large config actually needs it
    # (keeps v7x's smaller 64 MiB physical / 32 MiB scoped budget safe).
    resident = sum(2 * (w.size * w.dtype.itemsize + b.size * b.dtype.itemsize)
                   for w, b in zip(weights, biases))
    vmem_est = tm * per_row + resident
    cp_kwargs = dict(dimension_semantics=("parallel",))
    if vmem_est > 28 * (1 << 20):
        cp_kwargs["vmem_limit_bytes"] = min(int(vmem_est * 1.25) + (1 << 20),
                                            64 * (1 << 20))

    out = pl.pallas_call(
        _make_fused_mlp_kernel(num_layers),
        out_shape=jax.ShapeDtypeStruct((batch_pad, out_dim), jnp.float32),
        grid=(batch_pad // tm,),
        in_specs=in_specs,
        out_specs=pl.BlockSpec((tm, out_dim), lambda i: (i, 0)),
        compiler_params=pltpu.CompilerParams(**cp_kwargs),
    )(*args)

    if batch_pad != batch:
        out = out[:batch]
    return out


# ------------------------------- References ----------------------------------

def embedding_model_reference_f32(params, feat):
    """PyTorch eval-mode semantics in full f32 (unpadded weights)."""
    x = feat.astype(jnp.float32)
    for w, b, relu in zip(params["ref_weights"], params["ref_biases"],
                          params["relu"]):
        x = x @ w + b
        if relu:
            x = jnp.maximum(x, 0.0)
    return x


def embedding_model_reference_bf16(params, feat):
    """Same numerics as the kernel (bf16 operands, f32 accumulation)."""
    x = feat.astype(jnp.bfloat16)
    num_layers = len(params["weights"])
    for i, (w, b) in enumerate(zip(params["weights"], params["biases"])):
        y = jnp.dot(x, w, preferred_element_type=jnp.float32) + b
        if i != num_layers - 1:
            y = jnp.maximum(y, 0.0)
            x = y.astype(jnp.bfloat16)
        else:
            x = y
    return x


# --------------------------------- Main ---------------------------------------

if __name__ == "__main__":
    key = jax.random.PRNGKey(0)
    batch = 8
    input_size = 32

    k_in, k_p1, k_p2 = jax.random.split(key, 3)
    feat = jax.random.normal(k_in, (batch, input_size), jnp.float32)

    # Config 1: default emb_size=[64]  -> single Linear layer.
    params_default = init_embedding_model(k_p1, input_size, emb_size=(64,))
    out_default = embedding_model_forward(params_default, feat)
    jax.block_until_ready(out_default)
    assert out_default.shape == (batch, 64)
    assert jnp.allclose(out_default,
                        embedding_model_reference_bf16(params_default, feat),
                        atol=2e-3, rtol=2e-3)
    assert jnp.allclose(out_default,
                        embedding_model_reference_f32(params_default, feat),
                        atol=3e-2, rtol=3e-2)

    # Config 2: emb_size=[32, 64] -> Linear+BN+ReLU(+Dropout=id) then Linear,
    # fused into the same single kernel.
    params_deep = init_embedding_model(k_p2, input_size, emb_size=(32, 64))
    out_deep = embedding_model_forward(params_deep, feat)
    jax.block_until_ready(out_deep)
    assert out_deep.shape == (batch, 64)
    assert jnp.allclose(out_deep,
                        embedding_model_reference_bf16(params_deep, feat),
                        atol=2e-3, rtol=2e-3)
    assert jnp.allclose(out_deep,
                        embedding_model_reference_f32(params_deep, feat),
                        atol=3e-2, rtol=3e-2)

    print("KERNEL_OK")
</pallas_src>

<mosaic_0001>
module attributes {stable_mosaic.version = 11 : i64} {
  func.func @kernel(%arg0: i32, %arg1: memref<8x32xbf16, #tpu.memory_space<vmem>>, %arg2: memref<32x64xbf16, #tpu.memory_space<vmem>>, %arg3: memref<1x64xf32, #tpu.memory_space<vmem>>, %arg4: memref<8x64xf32, #tpu.memory_space<vmem>>) attributes {dimension_semantics = [#tpu.dimension_semantics<parallel>], iteration_bounds = array<i64: 1>, scalar_prefetch = 0 : i64, scratch_operands = 0 : i64, tpu.core_type = #tpu.core_type<tc>, window_params = [{transform_indices = @transform_0, window_bounds = array<i64: 8, 32>}, {pipeline_mode = #tpu.pipeline_mode<synchronous>, transform_indices = @transform_1, window_bounds = array<i64: 32, 64>}, {pipeline_mode = #tpu.pipeline_mode<synchronous>, transform_indices = @transform_2, window_bounds = array<i64: 1, 64>}, {transform_indices = @transform_3, window_bounds = array<i64: 8, 64>}]} {
    %c0 = arith.constant 0 : index
    %c0_0 = arith.constant 0 : index
    %0 = vector.load %arg1[%c0, %c0_0] : memref<8x32xbf16, #tpu.memory_space<vmem>>, vector<8x32xbf16>
    %c0_1 = arith.constant 0 : index
    %c0_2 = arith.constant 0 : index
    %1 = vector.load %arg2[%c0_1, %c0_2] : memref<32x64xbf16, #tpu.memory_space<vmem>>, vector<32x64xbf16>
    %c0_3 = arith.constant 0 : index
    %c0_4 = arith.constant 0 : index
    %2 = vector.load %arg3[%c0_3, %c0_4] : memref<1x64xf32, #tpu.memory_space<vmem>>, vector<1x64xf32>
    %cst = arith.constant dense<0.000000e+00> : vector<8x64xf32>
    %3 = tpu.matmul %0, %1, %cst {dimension_numbers = #tpu.dot_dimension_numbers<[1], [0], [0], [1], [0, 0, 1, 1], [], []>} : vector<8x32xbf16>, vector<32x64xbf16>, vector<8x64xf32> -> vector<8x64xf32>
    %4 = vector.broadcast %2 : vector<1x64xf32> to vector<8x64xf32>
    %5 = arith.addf %3, %4 : vector<8x64xf32>
    %c0_5 = arith.constant 0 : index
    %c0_6 = arith.constant 0 : index
    %6 = vector.load %arg4[%c0_5, %c0_6] : memref<8x64xf32, #tpu.memory_space<vmem>>, vector<8x64xf32>
    tpu.vector_store %arg4[%c0_5, %c0_6], %5 {strides = array<i32>} : memref<8x64xf32, #tpu.memory_space<vmem>>, vector<8x64xf32>,
    return
  }
  func.func @transform_0(%arg0: i32) -> (i32, i32) {
    %c0_i32 = arith.constant 0 : i32
    %c0_i32_0 = arith.constant 0 : i32
    return %arg0, %c0_i32 : i32, i32
  }
  func.func @transform_1(%arg0: i32) -> (i32, i32) {
    %c0_i32 = arith.constant 0 : i32
    %c0_i32_0 = arith.constant 0 : i32
    %c0_i32_1 = arith.constant 0 : i32
    return %c0_i32, %c0_i32_0 : i32, i32
  }
  func.func @transform_2(%arg0: i32) -> (i32, i32) {
    %c0_i32 = arith.constant 0 : i32
    %c0_i32_0 = arith.constant 0 : i32
    %c0_i32_1 = arith.constant 0 : i32
    return %c0_i32, %c0_i32_0 : i32, i32
  }
  func.func @transform_3(%arg0: i32) -> (i32, i32) {
    %c0_i32 = arith.constant 0 : i32
    %c0_i32_0 = arith.constant 0 : i32
    return %arg0, %c0_i32 : i32, i32
  }
}

</mosaic_0001>

<bundles_post_ra>
// kernel: tpu_custom_call.1
= control target key start
LH: loop header
LB: loop body
LE: loop exit
PB: predicated region body
PF: predicated region fallthrough
CT: control target
= control target key end

     0   :  { %8 = vsyncpa [#allocation3], 0  ;;  %s297_s0 = inlined_call_operand.hbm [shape: bf16[8,32], index: 0, kind: input, shape index: {}]   ;;  %s298_s1 = inlined_call_operand.hbm [shape: bf16[32,64], index: 1, kind: input, shape index: {}]   ;;  %s299_s2 = inlined_call_operand.vmem [shape: f32[1,64], index: 2, kind: input, shape index: {}]   ;;  %s300_s3 = inlined_call_operand.hbm [shape: f32[8,64], index: 3, kind: output, shape index: {}]  }
   0x1   :  { %9 = vsyncpa [#allocation6], 0 }
   0x2   :  { %10 = vsyncpa [#allocation4], 0  ;;  %s224_s12 = smov [#allocation2]   ;;  %s225_s14 = smov [#allocation5]  }
   0x3   :  { %s17_s13 = sshll.u32 %s224_s12, 4  ;;  %s26_s15 = sshll.u32 %s225_s14, 4  ;;  %s18_s13 = int_to_ptr.vmem [resolvable:$true] %s17_s13  ;;  %s251_s15 = int_to_ptr.vmem [resolvable:$true] %s26_s15 }
   0x4   :  { %s152_s18 = scalar_lea.hbm %s297_s0, 64 }
   0x5   :  { %p153_p0 = scmp.ne.s32.totalorder %s297_s0, %s152_s18  ;;  %p156_p1 = scmp.lt.u32.totalorder %s152_s18, %s297_s0 }
   0x7   :  { %p158_p2 = pnand %p156_p1, %p153_p0 }
   0x9   :  { %161 = shalt.err (!%p158_p2)
}
   0xa   :  { %s162_s23 = scalar_lea.vmem %s18_s13, 64  ;;  %p167_p4 = scmp.lt.s32.totalorder %s18_s13, %s18_s13 }
   0xb   :  { %p163_p3 = scmp.ne.s32.totalorder %s18_s13, %s162_s23  ;;  %p168_p5 = scmp.lt.s32.totalorder %s162_s23, %s162_s23 }
   0xd   :  { %p169_p6 = por %p168_p5, %p167_p4 }
   0xf   :  { %p170_p7 = pnand %p169_p6, %p163_p3 }
  0x11   :  { %173 = shalt.err (!%p170_p7)
}
  0x12   :  { %20 = dma.hbm_to_vmem [thread:$0]  %s297_s0, 64, %s18_s13, [#allocation3]  }
  0x13   :  { %s174_s28 = scalar_lea.hbm %s298_s1, 256 }
  0x14   :  { %p175_p8 = scmp.ne.s32.totalorder %s298_s1, %s174_s28  ;;  %p178_p9 = scmp.lt.u32.totalorder %s174_s28, %s298_s1 }
  0x16   :  { %p180_p10 = pnand %p178_p9, %p175_p8 }
  0x18   :  { %183 = shalt.err (!%p180_p10)
}
  0x19   :  { %s184_s6 = scalar_lea.vmem %s251_s15, 256  ;;  %p189_p12 = scmp.lt.s32.totalorder %s251_s15, %s251_s15 }
  0x1a   :  { %p185_p11 = scmp.ne.s32.totalorder %s251_s15, %s184_s6  ;;  %p190_p13 = scmp.lt.s32.totalorder %s184_s6, %s184_s6 }
  0x1c   :  { %p191_p0 = por %p190_p13, %p189_p12 }
  0x1e   :  { %p192_p1 = pnand %p191_p0, %p185_p11 }
  0x20   :  { %195 = shalt.err (!%p192_p1)
}
  0x21   :  { %s226_s0 = smov 64   ;;  %s227_s7 = smov 4  }
  0x22   :  { %32 = dma.hbm_to_vmem [thread:$0]  %s298_s1, 256, %s251_s15, [#allocation6], %s226_s0, %s226_s0, %s227_s7  }
  0x23   :  { %218 = dma.done.wait [#allocation3], 64  }
  0x24   :  { %219 = vsyncadd [#allocation3], 4294967232 }
  0x25   :  { %220 = dma.done.wait [#allocation6], 256  }
  0x26   :  { %221 = vsyncadd [#allocation6], 4294967040  ;;  %v228_v0 = vmov 0.0   ;;  %vm229_vm0 = vmmov 0   ;;  %v150_v1 = vld [vmem:[#allocation5] sm:$0xff]   ;;  %v151_v2 = vld [vmem:[#allocation5 + $0x8] sm:$0xff]  }
  0x27   :  { %135 = vmatprep.subr.bf16.mxu0 %v228_v0  ;;  %139 = vmatprep.mubr.msk.bf16.mxu0 %vm229_vm0, %v228_v0  ;;  %v42_v3 = vld [vmem:[#allocation2] sm:$0xf]  ;;  %vm66_vm1 = vcmask 261120   ;;  %s230_s1 = smov [#allocation7]   ;;  %vm110_vm2 = vcmask 523264  }
  0x28   :  { %136 = vmatpush3.bf16.msra.mxu0 %v150_v1  ;;  %v128_v4 = vld [vmem:[%s299_s2] ss:$0 sm:$0xff]  ;;  %s118_s12 = sshll.u32 %s230_s1, 4  ;;  %s119_s12 = int_to_ptr.vmem [resolvable:$true] %s118_s12 }
  0x29   :  { %137 = vmatprep.subr.bf16.mxu0 %v228_v0  ;;  %s196_s13 = scalar_lea.vmem %s119_s12, 128  ;;  %p201_p3 = scmp.lt.s32.totalorder %s119_s12, %s119_s12 }
  0x2a   :  { %p197_p2 = scmp.ne.s32.totalorder %s119_s12, %s196_s13  ;;  %p202_p4 = scmp.lt.s32.totalorder %s196_s13, %s196_s13 }
  0x2c   :  { %138 = vmatpush3.bf16.msra.mxu0 %v151_v2  ;;  %p203_p5 = por %p202_p4, %p201_p3 }
  0x2e   :  { %p204_p6 = pnand %p203_p5, %p197_p2 }
  0x2f   :  { %140 = vmatmul.mubr.msk.bf16.vlgmr.msra.gmra.mrb[0].mxu0 %vm66_vm1, %v42_v3 }
 0x102   :  { %v104_v5 = vpop.f32.mrb[0].mxu0 }
 0x103   :  { %v105_v6 = vadd.f32 %v128_v4, %v104_v5  ;;  %v141_v7 = vpop.f32.mrb[1].mxu0 }
 0x104   :  { %v107_v8 = vpop.f32.mrb[2].mxu0 }
 0x105   :  { %v142_v9 = vpop.f32.mrb[3].mxu0  ;;  %111 = vst.msk [vmem:[#allocation7] sm:$0xff] %vm110_vm2, %v105_v6 }
 0x106   :  { %207 = shalt.err (!%p204_p6)
}
 0x107   :  { %s208_s2 = scalar_lea.hbm %s300_s3, 128 }
 0x108   :  { %p209_p7 = scmp.ne.s32.totalorder %s300_s3, %s208_s2  ;;  %p212_p8 = scmp.lt.u32.totalorder %s208_s2, %s300_s3 }
 0x10a   :  { %p214_p9 = pnand %p212_p8, %p209_p7 }
 0x10c   :  { %217 = shalt.err (!%p214_p9)
}
 0x10d   :  { %121 = dma.vmem_to_hbm [thread:$0]  %s119_s12, 128, %s300_s3, [#allocation4]  }
 0x10e   :  { %222 = dma.done.wait [#allocation4], 128  }
 0x10f   :  { %223 = vsyncadd [#allocation4], 4294967168 }
 0x110   :  { %125 = vsyncpa [#allocation3], 1 }
 0x111   :  { %126 = vsyncpa [#allocation6], 1 }
 0x112   :  { %127 = vsyncpa [#allocation4], 1 }

</bundles_post_ra>
